<compile_context>
chip_gen: v5e
topology: v5e:2x2
jax: 0.10.0
libtpu: 0.0.40
codegen_flags: <defaults>
</compile_context>

<pallas_src>
import functools

import jax
import jax.numpy as jnp
import numpy as np
from jax.experimental import pallas as pl
from jax.experimental.pallas import tpu as pltpu


def _cdiv(a, b):
    return (a + b - 1) // b


def _round_up(a, b):
    return _cdiv(a, b) * b


# ----------------------------------------------------------------------------
# Pallas kernel
# ----------------------------------------------------------------------------
def _fold_rows(x):
    """(tb, D) -> (8, D) partial sums by adding groups of 8 rows (VPU adds)."""
    tb, d = x.shape
    if tb == 8:
        return x
    return jnp.sum(x.reshape(tb // 8, 8, d), axis=0)


def _cheat_loss_kernel(loss_type, ce_mode, reduce_axis, *refs):
    if ce_mode == "masked":
        y_pred_ref, y_true_ref, w_ref, mask_ref, loss_ref, scores_ref = refs
    else:
        y_pred_ref, y_true_ref, w_ref, loss_ref, scores_ref = refs
        mask_ref = None

    j = pl.program_id(reduce_axis)

    # Output blocks are resident across the reduction axis: init at j == 0,
    # accumulate every step, HBM writeback happens when the block retires.
    @pl.when(j == 0)
    def _():
        loss_ref[...] = jnp.zeros_like(loss_ref)
        scores_ref[...] = jnp.zeros_like(scores_ref)

    yp = y_pred_ref[...].astype(jnp.float32)
    yt = y_true_ref[...].astype(jnp.float32)
    w = w_ref[...].astype(jnp.float32)

    if loss_type == "mse":
        diff = (yt - yp) ** 2
    elif loss_type == "abs":
        diff = jnp.abs(yt - yp)
    elif loss_type == "huber":
        # SmoothL1Loss(reduce=False), beta=1
        d = yp - yt
        ad = jnp.abs(d)
        diff = jnp.where(ad < 1.0, 0.5 * d * d, ad - 0.5)
    elif loss_type == "cross_entropy":
        # Compile-time specialized binarization of the targets.
        if ce_mode == "all":
            yt = pl.reciprocal(1.0 + jnp.exp(-0.1 * yt))          # sigmoid(0.1*x)
        elif ce_mode == "masked":
            m = mask_ref[...]                                      # (1, D)
            sig = pl.reciprocal(1.0 + jnp.exp(-0.1 * yt))
            yt = jnp.where(m > 0.5, sig, yt)
        # Stable BCE-with-logits term:
        #   max(-yp, 0) + log(exp(-max) + exp(-yp-max)) == max(-yp, 0)
        #                                                  + log(1 + exp(-|yp|))
        # (one exp + one log instead of two exps + one log).
        max_val = jnp.maximum(-yp, 0.0)
        diff = yp - yp * yt + max_val + jnp.log(1.0 + jnp.exp(-jnp.abs(yp)))
    elif loss_type == "cosine":
        yp_n = yp * jax.lax.rsqrt(jnp.sum(yp * yp, axis=1, keepdims=True))
        yt_n = yt * jax.lax.rsqrt(jnp.sum(yt * yt, axis=1, keepdims=True))
        diff = 1.0 - yp_n * yt_n
    else:
        raise ValueError(f"unknown loss_type: {loss_type}")

    # scores weights: sqrt(w) normalized per row.  Padded zero-weight rows
    # have a zero row-sum; guard so they contribute exactly zero (the
    # reference would NaN only for all-zero-weight rows, which do not occur
    # in real inputs).
    sw = jnp.sqrt(w)
    row = jnp.sum(sw, axis=1, keepdims=True)
    sw = sw * jnp.where(row > 0.0, pl.reciprocal(row), 0.0)

    # TODO(synk): on v7x the row-fold could move to the idle MXU (constant
    # (8, tb) 0/1 fold matrix via jnp.dot) to free VALU slots; kept on the VPU.
    loss_ref[...] += _fold_rows(diff * w)
    scores_ref[...] += _fold_rows(diff * sw)


# ----------------------------------------------------------------------------
# JAX-side fallback glue (only used when the CE column sets are not a full
# permutation of the feature axis).
# ----------------------------------------------------------------------------
def _binarize_targets(y_pred, y_true, not_bin_cols, bin_cols):
    not_bin_cols = list(not_bin_cols)
    bin_cols = list(bin_cols)
    if len(not_bin_cols) > 0:
        not_binary = y_true[:, jnp.asarray(not_bin_cols, jnp.int32)]
        binarized = jax.nn.sigmoid(0.1 * not_binary)
        if len(bin_cols) > 0:
            binary = y_true[:, jnp.asarray(bin_cols, jnp.int32)]
            y_true = jnp.concatenate([binarized, binary], axis=1)
        else:
            y_true = binarized
    if y_pred is not None:
        reordering = jnp.asarray(not_bin_cols + bin_cols, jnp.int32)
        y_pred = y_pred[:, reordering]
    return y_pred, y_true


# ----------------------------------------------------------------------------
# Chip detection / tiling config
# ----------------------------------------------------------------------------
_LIVE_F32_ROWS = 12   # estimate of live f32 (tb, D) intermediates in the body


def _tpu_config():
    """Best-effort (per-core VMEM bytes, tensorcores-per-device)."""
    kind = ""
    try:
        kind = jax.devices()[0].device_kind.lower()
    except Exception:
        pass

    vmem = None
    try:
        vmem = int(pltpu.get_tpu_info().vmem_capacity_bytes)
    except Exception:
        vmem = None
    if vmem is None:
        vmem = (64 << 20) if "v7" in kind else (128 << 20)
    if "v7" in kind:
        vmem = min(vmem, 64 << 20)          # v7x: 64 MiB per TensorCore

    # TensorCores per jax device: v7x and the megacore parts (v4 / v5p) expose
    # 2 TCs per device; v5e / v6e (and older per-core devices) expose 1.
    if "v7" in kind:
        num_tc = 2
    elif ("lite" in kind) or ("v5e" in kind) or ("v6" in kind) \
            or ("v2" in kind) or ("v3" in kind):
        num_tc = 1
    elif ("v4" in kind) or ("v5p" in kind) or (kind.strip() == "tpu v5"):
        num_tc = 2
    else:
        num_tc = 1
    return vmem, num_tc


# ----------------------------------------------------------------------------
# Wrapper
# ----------------------------------------------------------------------------
def cheat_loss(y_pred, y_true, forgive_weights, loss_type,
               not_bin_cols=(), bin_cols=()):
    # TODO(synk): forward only; a custom_vjp would be needed for jax.grad.
    loss_type = loss_type.lower()
    D0 = y_pred.shape[1]

    yp_in, yt_in, w_in = y_pred, y_true, forgive_weights
    ce_mode = "none"
    mask_arr = None

    if loss_type == "cross_entropy":
        nb = list(not_bin_cols)
        bc = list(bin_cols)
        perm = nb + bc
        if len(nb) > 0 and sorted(perm) == list(range(D0)):
            # Fused path: binarize in-kernel and fold the column reordering
            # into an inverse permutation of the weights (sum over all
            # elements and row-sums of sqrt(w) are permutation invariant, so
            # loss and scores are unchanged).
            inv = np.argsort(np.asarray(perm, np.int64))
            w_in = forgive_weights[:, jnp.asarray(inv, jnp.int32)]
            if len(bc) == 0:
                ce_mode = "all"            # every column binarized: no mask
            else:
                ce_mode = "masked"
                m = np.zeros((1, D0), np.float32)
                m[0, np.asarray(nb, np.int64)] = 1.0
                mask_arr = jnp.asarray(m)
        else:
            # TODO(synk): non-permutation column sets fall back to JAX gather glue.
            yp_in, yt_in = _binarize_targets(y_pred, y_true, nb, bc)

    B, D = yp_in.shape
    inv_total = 1.0 / float(B * D)

    # ---- generation-aware tiling -------------------------------------------
    vmem_phys, num_tc = _tpu_config()
    vmem_limit = max(32 << 20, min(vmem_phys - (24 << 20), 100 << 20))
    tile_budget = (vmem_limit * 4) // 5          # 20% headroom under the limit

    in_row = D * (yp_in.dtype.itemsize + yt_in.dtype.itemsize
                  + w_in.dtype.itemsize)
    # 2x double-buffered input streams + live f32 intermediates per tile row.
    per_row = 2 * in_row + _LIVE_F32_ROWS * 4 * D
    tb = max(8, (tile_budget // per_row) // 8 * 8)   # no fixed row cap

    B_pad = _round_up(B, 8)
    tb = min(tb, B_pad)
    # Split the batch across TensorCores only where a second TC exists.
    ncores = 2 if (num_tc >= 2 and B_pad >= 16) else 1
    if ncores == 2:
        tb = min(tb, _round_up(_cdiv(B_pad, 2), 8))
    nbpc = _cdiv(B_pad, tb * ncores)       # batch blocks per core
    B_total = tb * ncores * nbpc

    if B_total > B:
        pad = B_total - B
        # value-1 rows keep every loss branch finite; weight-0 rows make the
        # padded contribution exactly zero for both loss and scores.
        yp_in = jnp.pad(yp_in, ((0, pad), (0, 0)), constant_values=1.0)
        yt_in = jnp.pad(yt_in, ((0, pad), (0, 0)), constant_values=1.0)
        w_in = jnp.pad(w_in, ((0, pad), (0, 0)), constant_values=0.0)

    # ---- grid / specs --------------------------------------------------------
    if ncores == 2:
        # TODO(synk): on v7x, verify the leading "parallel" axis shards across
        # both TensorCores; switch to pltpu.CORE_PARALLEL if it does not.
        grid = (2, nbpc)
        in_map = lambda c, j: (c * nbpc + j, 0)
        const_map = lambda c, j: (0, 0)
        out_map = lambda c, j: (c, 0)
        dim_sem = ("parallel", "arbitrary")
        reduce_axis = 1
    else:
        grid = (nbpc,)
        in_map = lambda j: (j, 0)
        const_map = lambda j: (0, 0)
        out_map = lambda j: (0, 0)
        dim_sem = ("arbitrary",)
        reduce_axis = 0

    in_specs = [pl.BlockSpec((tb, D), in_map),
                pl.BlockSpec((tb, D), in_map),
                pl.BlockSpec((tb, D), in_map)]
    inputs = [yp_in, yt_in, w_in]
    if ce_mode == "masked":
        in_specs.append(pl.BlockSpec((1, D), const_map))
        inputs.append(mask_arr)

    kernel = functools.partial(_cheat_loss_kernel, loss_type, ce_mode,
                               reduce_axis)

    # Advisory cost estimate: purely HBM-bandwidth-bound streaming reduction.
    n_elem = B_total * D
    transc_per = 1                          # sqrt(w)
    if loss_type == "cross_entropy":
        transc_per += 2                     # exp + log
        if ce_mode in ("all", "masked"):
            transc_per += 2                 # sigmoid exp + reciprocal
    elif loss_type == "cosine":
        transc_per += 1
    bytes_accessed = int(sum(int(np.prod(a.shape)) * a.dtype.itemsize
                             for a in inputs) + 2 * ncores * 8 * D * 4)
    cost = pl.CostEstimate(flops=int(12 * n_elem),
                           transcendentals=int(transc_per * n_elem),
                           bytes_accessed=bytes_accessed)

    loss_part, scores_part = pl.pallas_call(
        kernel,
        out_shape=(jax.ShapeDtypeStruct((ncores * 8, D), jnp.float32),
                   jax.ShapeDtypeStruct((ncores * 8, D), jnp.float32)),
        grid_spec=pltpu.PrefetchScalarGridSpec(
            num_scalar_prefetch=0,
            grid=grid,
            in_specs=in_specs,
            out_specs=[pl.BlockSpec((8, D), out_map),
                       pl.BlockSpec((8, D), out_map)]),
        compiler_params=pltpu.CompilerParams(
            dimension_semantics=dim_sem,
            vmem_limit_bytes=int(vmem_limit)),
        cost_estimate=cost,
    )(*inputs)

    # Tiny final reduction + mean scaling in XLA (uses the true B*D).
    loss = jnp.sum(loss_part) * inv_total
    scores = jnp.sum(scores_part) * inv_total
    return loss, scores


# ----------------------------------------------------------------------------
# Pure-JAX reference (mirrors the PyTorch forward exactly)
# ----------------------------------------------------------------------------
def ref_cheat_loss(y_pred, y_true, w, loss_type, not_bin_cols=(), bin_cols=()):
    loss_type = loss_type.lower()
    if loss_type == "mse":
        diff = (y_true - y_pred) ** 2
    elif loss_type == "abs":
        diff = jnp.abs(y_true - y_pred)
    elif loss_type == "huber":
        d = y_pred - y_true
        ad = jnp.abs(d)
        diff = jnp.where(ad < 1.0, 0.5 * d * d, ad - 0.5)
    elif loss_type == "cross_entropy":
        yp, yt = _binarize_targets(y_pred, y_true, not_bin_cols, bin_cols)
        max_val = jnp.maximum(-yp, 0.0)
        diff = (yp - yp * yt + max_val
                + jnp.log(jnp.exp(-max_val) + jnp.exp(-yp - max_val)))
    elif loss_type == "cosine":
        yp = y_pred / jnp.linalg.norm(y_pred, axis=1, keepdims=True)
        yt = y_true / jnp.linalg.norm(y_true, axis=1, keepdims=True)
        diff = 1.0 - yp * yt
    loss = jnp.mean(diff * w)
    sw = jnp.sqrt(w)
    sw = sw / jnp.sum(sw, axis=1, keepdims=True)
    scores = jnp.mean(diff * sw)
    return loss, scores


# ----------------------------------------------------------------------------
if __name__ == "__main__":
    key = jax.random.PRNGKey(0)
    k1, k2, k3 = jax.random.split(key, 3)

    B, D = 16, 128  # small shapes; batch=16, hidden=128
    y_pred = jax.random.normal(k1, (B, D), jnp.float32)
    y_true = jax.random.normal(k2, (B, D), jnp.float32)
    forgive_weights = jax.random.uniform(k3, (B, D), jnp.float32,
                                         minval=0.1, maxval=1.0)

    # Non-trivial column sets (even = not-binary, odd = binary) so the fused
    # cross-entropy permutation handling is exercised.
    not_bin_cols = list(range(0, D, 2))
    bin_cols = list(range(1, D, 2))

    for lt in ["mse", "abs", "huber", "cross_entropy", "cosine"]:
        loss, scores = cheat_loss(y_pred, y_true, forgive_weights, lt,
                                  not_bin_cols, bin_cols)
        loss = jax.block_until_ready(loss)
        scores = jax.block_until_ready(scores)
        r_loss, r_scores = ref_cheat_loss(y_pred, y_true, forgive_weights, lt,
                                          not_bin_cols, bin_cols)
        np.testing.assert_allclose(np.asarray(loss), np.asarray(r_loss),
                                   rtol=1e-5, atol=1e-5)
        np.testing.assert_allclose(np.asarray(scores), np.asarray(r_scores),
                                   rtol=1e-5, atol=1e-5)

    # All-not-binary column set exercises the maskless "all" CE specialization.
    loss, scores = cheat_loss(y_pred, y_true, forgive_weights,
                              "cross_entropy", list(range(D)), [])
    loss = jax.block_until_ready(loss)
    scores = jax.block_until_ready(scores)
    r_loss, r_scores = ref_cheat_loss(y_pred, y_true, forgive_weights,
                                      "cross_entropy", list(range(D)), [])
    np.testing.assert_allclose(np.asarray(loss), np.asarray(r_loss),
                               rtol=1e-5, atol=1e-5)
    np.testing.assert_allclose(np.asarray(scores), np.asarray(r_scores),
                               rtol=1e-5, atol=1e-5)

    # Unaligned batch exercises the zero-weight padding path.
    Bo = 13
    yo_p, yo_t, wo = y_pred[:Bo], y_true[:Bo], forgive_weights[:Bo]
    for lt in ["huber", "cross_entropy"]:
        loss, scores = cheat_loss(yo_p, yo_t, wo, lt, not_bin_cols, bin_cols)
        loss = jax.block_until_ready(loss)
        scores = jax.block_until_ready(scores)
        r_loss, r_scores = ref_cheat_loss(yo_p, yo_t, wo, lt,
                                          not_bin_cols, bin_cols)
        np.testing.assert_allclose(np.asarray(loss), np.asarray(r_loss),
                                   rtol=1e-5, atol=1e-5)
        np.testing.assert_allclose(np.asarray(scores), np.asarray(r_scores),
                                   rtol=1e-5, atol=1e-5)

    print("KERNEL_OK")
</pallas_src>

<mosaic_0001>
module attributes {stable_mosaic.version = 11 : i64} {
  func.func @_cheat_loss_kernel(%arg0: i32, %arg1: memref<16x128xf32, #tpu.memory_space<vmem>>, %arg2: memref<16x128xf32, #tpu.memory_space<vmem>>, %arg3: memref<16x128xf32, #tpu.memory_space<vmem>>, %arg4: memref<8x128xf32, #tpu.memory_space<vmem>>, %arg5: memref<8x128xf32, #tpu.memory_space<vmem>>) attributes {dimension_semantics = [#tpu.dimension_semantics<arbitrary>], iteration_bounds = array<i64: 1>, scalar_prefetch = 0 : i64, scratch_operands = 0 : i64, tpu.core_type = #tpu.core_type<tc>, window_params = [{transform_indices = @transform_0, window_bounds = array<i64: 16, 128>}, {transform_indices = @transform_1, window_bounds = array<i64: 16, 128>}, {transform_indices = @transform_2, window_bounds = array<i64: 16, 128>}, {pipeline_mode = #tpu.pipeline_mode<synchronous>, transform_indices = @transform_3, window_bounds = array<i64: 8, 128>}, {pipeline_mode = #tpu.pipeline_mode<synchronous>, transform_indices = @transform_4, window_bounds = array<i64: 8, 128>}]} {
    %c0_i32 = arith.constant 0 : i32
    %0 = arith.cmpi eq, %arg0, %c0_i32 : i32
    %1 = arith.extui %0 : i1 to i32
    %c0_i32_0 = arith.constant 0 : i32
    %2 = arith.cmpi ne, %1, %c0_i32_0 : i32
    scf.if %2 {
      %cst_18 = arith.constant 0.000000e+00 : f32
      %30 = vector.broadcast %cst_18 : f32 to vector<8x128xf32>
      %c0_19 = arith.constant 0 : index
      %c0_20 = arith.constant 0 : index
      %31 = vector.load %arg4[%c0_19, %c0_20] : memref<8x128xf32, #tpu.memory_space<vmem>>, vector<8x128xf32>
      tpu.vector_store %arg4[%c0_19, %c0_20], %30 {strides = array<i32>} : memref<8x128xf32, #tpu.memory_space<vmem>>, vector<8x128xf32>,
      %cst_21 = arith.constant 0.000000e+00 : f32
      %32 = vector.broadcast %cst_21 : f32 to vector<8x128xf32>
      %c0_22 = arith.constant 0 : index
      %c0_23 = arith.constant 0 : index
      %33 = vector.load %arg5[%c0_22, %c0_23] : memref<8x128xf32, #tpu.memory_space<vmem>>, vector<8x128xf32>
      tpu.vector_store %arg5[%c0_22, %c0_23], %32 {strides = array<i32>} : memref<8x128xf32, #tpu.memory_space<vmem>>, vector<8x128xf32>,
    } else {
    }
    %c0 = arith.constant 0 : index
    %c0_1 = arith.constant 0 : index
    %3 = vector.load %arg1[%c0, %c0_1] : memref<16x128xf32, #tpu.memory_space<vmem>>, vector<16x128xf32>
    %c0_2 = arith.constant 0 : index
    %c0_3 = arith.constant 0 : index
    %4 = vector.load %arg2[%c0_2, %c0_3] : memref<16x128xf32, #tpu.memory_space<vmem>>, vector<16x128xf32>
    %c0_4 = arith.constant 0 : index
    %c0_5 = arith.constant 0 : index
    %5 = vector.load %arg3[%c0_4, %c0_5] : memref<16x128xf32, #tpu.memory_space<vmem>>, vector<16x128xf32>
    %6 = arith.subf %4, %3 : vector<16x128xf32>
    %7 = arith.mulf %6, %6 : vector<16x128xf32>
    %8 = math.sqrt %5 : vector<16x128xf32>
    %cst = arith.constant dense<0.000000e+00> : vector<16xf32>
    %9 = vector.multi_reduction <add>, %8, %cst [1] : vector<16x128xf32> to vector<16xf32>
    %10 = vector.shape_cast %9 : vector<16xf32> to vector<16x1xf32>
    %cst_6 = arith.constant 0.000000e+00 : f32
    %11 = vector.broadcast %cst_6 : f32 to vector<16x1xf32>
    %12 = arith.cmpf ogt, %10, %11 : vector<16x1xf32>
    %13 = tpu.reciprocal %10 : vector<16x1xf32> -> vector<16x1xf32>
    %cst_7 = arith.constant 0.000000e+00 : f32
    %14 = vector.broadcast %cst_7 : f32 to vector<16x1xf32>
    %15 = arith.select %12, %13, %14 : vector<16x1xi1>, vector<16x1xf32>
    %16 = vector.broadcast %15 : vector<16x1xf32> to vector<16x128xf32>
    %17 = arith.mulf %8, %16 : vector<16x128xf32>
    %c0_8 = arith.constant 0 : index
    %c0_9 = arith.constant 0 : index
    %18 = vector.load %arg4[%c0_8, %c0_9] : memref<8x128xf32, #tpu.memory_space<vmem>>, vector<8x128xf32>
    %19 = arith.mulf %7, %5 : vector<16x128xf32>
    %20 = vector.shape_cast %19 : vector<16x128xf32> to vector<2x8x128xf32>
    %cst_10 = arith.constant dense<0.000000e+00> : vector<8x128xf32>
    %21 = vector.multi_reduction <add>, %20, %cst_10 [0] : vector<2x8x128xf32> to vector<8x128xf32>
    %22 = arith.addf %18, %21 : vector<8x128xf32>
    %c0_11 = arith.constant 0 : index
    %c0_12 = arith.constant 0 : index
    %23 = vector.load %arg4[%c0_11, %c0_12] : memref<8x128xf32, #tpu.memory_space<vmem>>, vector<8x128xf32>
    tpu.vector_store %arg4[%c0_11, %c0_12], %22 {strides = array<i32>} : memref<8x128xf32, #tpu.memory_space<vmem>>, vector<8x128xf32>,
    %c0_13 = arith.constant 0 : index
    %c0_14 = arith.constant 0 : index
    %24 = vector.load %arg5[%c0_13, %c0_14] : memref<8x128xf32, #tpu.memory_space<vmem>>, vector<8x128xf32>
    %25 = arith.mulf %7, %17 : vector<16x128xf32>
    %26 = vector.shape_cast %25 : vector<16x128xf32> to vector<2x8x128xf32>
    %cst_15 = arith.constant dense<0.000000e+00> : vector<8x128xf32>
    %27 = vector.multi_reduction <add>, %26, %cst_15 [0] : vector<2x8x128xf32> to vector<8x128xf32>
    %28 = arith.addf %24, %27 : vector<8x128xf32>
    %c0_16 = arith.constant 0 : index
    %c0_17 = arith.constant 0 : index
    %29 = vector.load %arg5[%c0_16, %c0_17] : memref<8x128xf32, #tpu.memory_space<vmem>>, vector<8x128xf32>
    tpu.vector_store %arg5[%c0_16, %c0_17], %28 {strides = array<i32>} : memref<8x128xf32, #tpu.memory_space<vmem>>, vector<8x128xf32>,
    return
  }
  func.func @transform_0(%arg0: i32) -> (i32, i32) {
    %c0_i32 = arith.constant 0 : i32
    %c0_i32_0 = arith.constant 0 : i32
    return %arg0, %c0_i32 : i32, i32
  }
  func.func @transform_1(%arg0: i32) -> (i32, i32) {
    %c0_i32 = arith.constant 0 : i32
    %c0_i32_0 = arith.constant 0 : i32
    return %arg0, %c0_i32 : i32, i32
  }
  func.func @transform_2(%arg0: i32) -> (i32, i32) {
    %c0_i32 = arith.constant 0 : i32
    %c0_i32_0 = arith.constant 0 : i32
    return %arg0, %c0_i32 : i32, i32
  }
  func.func @transform_3(%arg0: i32) -> (i32, i32) {
    %c0_i32 = arith.constant 0 : i32
    %c0_i32_0 = arith.constant 0 : i32
    %c0_i32_1 = arith.constant 0 : i32
    return %c0_i32, %c0_i32_0 : i32, i32
  }
  func.func @transform_4(%arg0: i32) -> (i32, i32) {
    %c0_i32 = arith.constant 0 : i32
    %c0_i32_0 = arith.constant 0 : i32
    %c0_i32_1 = arith.constant 0 : i32
    return %c0_i32, %c0_i32_0 : i32, i32
  }
}

</mosaic_0001>

<bundles_post_ra>
// kernel: tpu_custom_call.1
= control target key start
LH: loop header
LB: loop body
LE: loop exit
PB: predicated region body
PF: predicated region fallthrough
CT: control target
= control target key end

     0   :  { %10 = vsyncpa [#allocation3], 0  ;;  %s380_s0 = inlined_call_operand.hbm [shape: f32[16,128], index: 0, kind: input, shape index: {}]   ;;  %s381_s1 = inlined_call_operand.hbm [shape: f32[16,128], index: 1, kind: input, shape index: {}]   ;;  %s382_s2 = inlined_call_operand.hbm [shape: f32[16,128], index: 2, kind: input, shape index: {}]   ;;  %s383_s3 = inlined_call_operand.hbm [shape: f32[8,128], index: 3, kind: output, shape index: {0}]   ;;  %s384_s4 = inlined_call_operand.hbm [shape: f32[8,128], index: 4, kind: output, shape index: {1}]  }
   0x1   :  { %11 = vsyncpa [#allocation6], 0 }
   0x2   :  { %12 = vsyncpa [#allocation4], 0 }
   0x3   :  { %13 = vsyncpa [#allocation10], 0  ;;  %s31_s17 = sshll.u32 %s381_s1, 4  ;;  %s333_s18 = smov [#allocation5]   ;;  %s32_s17 = int_to_ptr.hbm [resolvable:$true] %s31_s17 }
   0x4   :  { %s33_s19 = sshll.u32 %s333_s18, 4  ;;  %s18_s22 = sshll.u32 %s380_s0, 4  ;;  %s34_s19 = int_to_ptr.vmem [resolvable:$true] %s33_s19  ;;  %s19_s22 = int_to_ptr.hbm [resolvable:$true] %s18_s22 }
   0x5   :  { %s334_s23 = smov 128   ;;  %s335_s24 = smov 8  }
   0x6   :  { %39 = dma.hbm_to_vmem [thread:$0]  %s32_s17, 256, %s34_s19, [#allocation6], %s334_s23, %s334_s23, %s335_s24  }
   0x7   :  { %s336_s25 = smov [#allocation2]   ;;  %s44_s29 = sshll.u32 %s382_s2, 4  ;;  %s45_s29 = int_to_ptr.hbm [resolvable:$true] %s44_s29 }
   0x8   :  { %s20_s26 = sshll.u32 %s336_s25, 4  ;;  %s337_s1 = smov [#allocation7]   ;;  %s21_s26 = int_to_ptr.vmem [resolvable:$true] %s20_s26 }
   0x9   :  { %26 = dma.hbm_to_vmem [thread:$0]  %s19_s22, 256, %s21_s26, [#allocation3], %s334_s23, %s334_s23, %s335_s24  }
   0xa   :  { %s46_s30 = sshll.u32 %s337_s1, 4  ;;  %s47_s30 = int_to_ptr.vmem [resolvable:$true] %s46_s30 }
   0xb   :  { %52 = dma.hbm_to_vmem [thread:$0]  %s45_s29, 256, %s47_s30, [#allocation6], %s334_s23, %s334_s23, %s335_s24  }
   0xc   :  { %325 = dma.done.wait [#allocation3], 256  }
   0xd   :  { %326 = vsyncadd [#allocation3], 4294967040 }
   0xe   :  { %327 = dma.done.wait [#allocation6], 512  }
   0xf   :  { %328 = vsyncadd [#allocation6], 4294966784  ;;  %v75_v0 = vld [vmem:[#allocation7] sm:$0xff]  ;;  %v76_v1 = vld [vmem:[#allocation7 + $0x8] sm:$0xff]  ;;  %s338_s0 = smov [#allocation8]   ;;  %s162_s7 = sshll.u32 %s383_s3, 4  ;;  %s163_s7 = int_to_ptr.hbm [resolvable:$true] %s162_s7 }
  0x10   :  { %197 = vrsqrt.f32 %v75_v0  ;;  %vm88_vm0 = vcmp.eq.f32.partialorder %v75_v0, inf  ;;  %v91_v13 = vand.u32 2147483648, %v75_v0  ;;  %vm90_vm1 = vcmp.eq.f32.partialorder %v75_v0, 0.0  ;;  %v71_v22 = vld [vmem:[#allocation2] sm:$0xff]  ;;  %v73_v23 = vld [vmem:[#allocation5] sm:$0xff]  ;;  %v72_v25 = vld [vmem:[#allocation2 + $0x8] sm:$0xff] }
  0x11   :  { %199 = vrsqrt.f32 %v76_v1  ;;  %vm100_vm2 = vcmp.eq.f32.partialorder %v76_v1, inf  ;;  %v103_v19 = vand.u32 2147483648, %v76_v1  ;;  %vm102_vm3 = vcmp.eq.f32.partialorder %v76_v1, 0.0  ;;  %v74_v26 = vld [vmem:[#allocation5 + $0x8] sm:$0xff]  ;;  %s160_s2 = sshll.u32 %s338_s0, 4  ;;  %s339_s3 = smov [#allocation9]   ;;  %s161_s2 = int_to_ptr.vmem [resolvable:$true] %s160_s2 }
  0x12   :  { %v77_v24 = vsub.f32 %v73_v23, %v71_v22  ;;  %v78_v27 = vsub.f32 %v74_v26, %v72_v25  ;;  %s171_s8 = sshll.u32 %s339_s3, 4  ;;  %s173_s11 = sshll.u32 %s384_s4, 4  ;;  %s172_s8 = int_to_ptr.vmem [resolvable:$true] %s171_s8  ;;  %s174_s11 = int_to_ptr.hbm [resolvable:$true] %s173_s11 }
  0x14   :  { %v79_v28 = vmul.f32 %v77_v24, %v77_v24  ;;  %v80_v29 = vmul.f32 %v78_v27, %v78_v27 }
  0x16   :  { %v198_v2 = vpop.eup %197  ;;  %v144_v30 = vmul.f32 %v79_v28, %v75_v0  ;;  %v145_v31 = vmul.f32 %v80_v29, %v76_v1 }
  0x17   :  { %v200_v3 = vpop.eup %199  ;;  %v82_v4 = vmul.f32 %v198_v2, %v75_v0 }
  0x18   :  { %v94_v5 = vmul.f32 %v200_v3, %v76_v1  ;;  %v146_v33 = vadd.f32 %v145_v31, %v144_v30 }
  0x19   :  { %v83_v6 = vmul.f32 %v198_v2, %v82_v4 }
  0x1a   :  { %v95_v7 = vmul.f32 %v200_v3, %v94_v5  ;;  %148 = vst [vmem:[#allocation8] sm:$0xff] %v146_v33 }
  0x1b   :  { %v84_v8 = vmul.f32 0.5, %v83_v6  ;;  %165 = dma.vmem_to_hbm [thread:$0]  %s161_s2, 128, %s163_s7, [#allocation4]  }
  0x1c   :  { %v96_v9 = vmul.f32 0.5, %v95_v7 }
  0x1d   :  { %v85_v10 = vsub.f32 1.5, %v84_v8 }
  0x1e   :  { %v97_v11 = vsub.f32 1.5, %v96_v9 }
  0x1f   :  { %v86_v12 = vmul.f32 %v198_v2, %v85_v10 }
  0x20   :  { %v98_v14 = vmul.f32 %v200_v3, %v97_v11 }
  0x21   :  { %v87_v15 = vmul.f32 %v86_v12, %v75_v0 }
  0x22   :  { %v99_v17 = vmul.f32 %v98_v14, %v76_v1 }
  0x23   :  { %v89_v16 = vsel %vm88_vm0, %v75_v0, %v87_v15 }
  0x24   :  { %v92_v18 = vsel %vm90_vm1, %v91_v13, %v89_v16  ;;  %v101_v20 = vsel %vm100_vm2, %v76_v1, %v99_v17 }
  0x25   :  { %105 = vadd.xlane.f32.xlu0 %v92_v18  ;;  %v104_v21 = vsel %vm102_vm3, %v103_v19, %v101_v20 }
  0x2d   :  { %107 = vadd.xlane.f32.xlu0 %v104_v21 }
  0x98   :  { %v106_v32 = vpop.xlane.xlu0 %105 }
  0x99   :  { %201 = vrcp.f32 %v106_v32  ;;  %v122_v39 = vand.u32 2147483648, %v106_v32  ;;  %vm116_vm5 = vweird.f32 %v106_v32  ;;  %v120_v41 = vand.u32 2147483647, %v106_v32 }
  0x9a   :  { %vm109_vm9 = vcmp.gt.f32.partialorder %v106_v32, 0.0 }
  0x9b   :  { %v123_v45 = vor.u32 1.1754944e-38, %v122_v39  ;;  %vm121_vm7 = vcmp.eq.f32.partialorder %v120_v41, 8.507059e+37 }
  0x9f   :  { %v202_v34 = vpop.eup %201 }
  0xa0   :  { %v112_v35 = vmul.f32 %v202_v34, %v106_v32  ;;  %v108_v36 = vpop.xlane.xlu0 %107  ;;  %vm117_vm4 = vweird.f32 %v202_v34 }
  0xa1   :  { %203 = vrcp.f32 %v108_v36  ;;  %vm118_vm6 = vmor %vm116_vm5, %vm117_vm4  ;;  %v136_v48 = vand.u32 2147483648, %v108_v36  ;;  %v134_v50 = vand.u32 2147483647, %v108_v36  ;;  %vm130_vm10 = vweird.f32 %v108_v36 }
  0xa2   :  { %v113_v37 = vsub.f32 1.0, %v112_v35  ;;  %vm110_vm13 = vcmp.gt.f32.partialorder %v108_v36, 0.0 }
  0xa3   :  { %v137_v53 = vor.u32 1.1754944e-38, %v136_v48  ;;  %vm135_vm12 = vcmp.eq.f32.partialorder %v134_v50, 8.507059e+37 }
  0xa4   :  { %v114_v38 = vmul.f32 %v202_v34, %v113_v37 }
  0xa6   :  { %v115_v40 = vadd.f32 %v202_v34, %v114_v38 }
  0xa7   :  { %v204_v42 = vpop.eup %203 }
  0xa8   :  { %v119_v43 = vsel %vm118_vm6, %v202_v34, %v115_v40  ;;  %v126_v44 = vmul.f32 %v204_v42, %v108_v36  ;;  %vm131_vm8 = vweird.f32 %v204_v42 }
  0xa9   :  { %v124_v47 = vsel %vm121_vm7, %v123_v45, %v119_v43  ;;  %vm132_vm11 = vmor %vm130_vm10, %vm131_vm8 }
  0xaa   :  { %v127_v46 = vsub.f32 1.0, %v126_v44  ;;  %v139_v51 = vsel %vm109_vm9, %v124_v47, 0.0 }
  0xab   :  { %v141_v55 = vmul.f32 %v139_v51, %v92_v18 }
  0xac   :  { %v128_v49 = vmul.f32 %v204_v42, %v127_v46 }
  0xad   :  { %v150_v59 = vmul.f32 %v141_v55, %v79_v28 }
  0xae   :  { %v129_v52 = vadd.f32 %v204_v42, %v128_v49 }
  0xb0   :  { %v133_v54 = vsel %vm132_vm11, %v204_v42, %v129_v52 }
  0xb1   :  { %v138_v56 = vsel %vm135_vm12, %v137_v53, %v133_v54 }
  0xb2   :  { %v140_v57 = vsel %vm110_vm13, %v138_v56, 0.0 }
  0xb3   :  { %v142_v58 = vmul.f32 %v140_v57, %v104_v21 }
  0xb5   :  { %v151_v60 = vmul.f32 %v142_v58, %v80_v29 }
  0xb7   :  { %v152_v61 = vadd.f32 %v151_v60, %v150_v59 }
  0xb9   :  { %154 = vst [vmem:[#allocation9] sm:$0xff] %v152_v61 }
  0xba   :  { %176 = dma.vmem_to_hbm [thread:$0]  %s172_s8, 128, %s174_s11, [#allocation10]  }
  0xbb   :  { %329 = dma.done.wait [#allocation4], 128  }
  0xbc   :  { %330 = vsyncadd [#allocation4], 4294967168 }
  0xbd   :  { %331 = dma.done.wait [#allocation10], 128  }
  0xbe   :  { %332 = vsyncadd [#allocation10], 4294967168 }
  0xbf   :  { %185 = vsyncpa [#allocation3], 1 }
  0xc0   :  { %186 = vsyncpa [#allocation6], 1 }
  0xc1   :  { %187 = vsyncpa [#allocation4], 1 }
  0xc2   :  { %188 = vsyncpa [#allocation10], 1 }

</bundles_post_ra>
